<compile_context>
chip_gen: v7x
topology: tpu7x:2x2x1
jax: 0.10.0
libtpu: 0.0.40
codegen_flags: <defaults>
</compile_context>

<pallas_src>
import functools

import jax
import jax.numpy as jnp
from jax.experimental import pallas as pl
from jax.experimental.pallas import tpu as pltpu


def _boundary(x, nfr, nlr, nfc, nlc):
    """|laplacian conv| of x (bn, H, W) with zero padding of 1 (separable 3x3 box sum)."""
    _, h, w = x.shape
    # Column pass (lane axis): x[:,:,j-1] + x[:,:,j] + x[:,:,j+1] with zero padding.
    # roll(+1) wraps the last column into j=0 -> zero it with nfc; roll(w-1) == roll(-1).
    cs = x + pltpu.roll(x, 1, 2) * nfc + pltpu.roll(x, w - 1, 2) * nlc
    # Row pass (sublane axis): cs[:,i-1] + cs[:,i] + cs[:,i+1] with zero padding.
    box = cs + pltpu.roll(cs, 1, 1) * nfr + pltpu.roll(cs, h - 1, 1) * nlr
    # laplacian conv = 8*center - (boxsum - center) = 9*center - boxsum
    return jnp.abs(9.0 * x - box)


def _boundary_loss_kernel(pred_ref, tgt_ref, out_ref, *, bn, n_total):
    c = pl.program_id(0)   # "parallel" axis (TensorCore split on v7x)
    a = pl.program_id(1)   # "arbitrary" accumulation axis

    @pl.when(a == 0)
    def _init():
        out_ref[...] = jnp.zeros_like(out_ref)

    pred = pred_ref[...].astype(jnp.float32)   # (bn, H, W)
    tgt = tgt_ref[...].astype(jnp.float32)
    _, h, w = pred.shape

    # 1-D conv edge masks (implement the conv's zero padding for the wrapped rolls).
    # Built once per step, shared by both boundary() calls; 0/1 f32 so the apply is a
    # pure VPU multiply (no per-shift compares).
    row = jax.lax.broadcasted_iota(jnp.int32, (1, h, 1), 1)
    col = jax.lax.broadcasted_iota(jnp.int32, (1, 1, w), 2)
    nfr = (row > 0).astype(jnp.float32)        # zero the wrapped-in top row
    nlr = (row < h - 1).astype(jnp.float32)    # zero the wrapped-in bottom row
    nfc = (col > 0).astype(jnp.float32)        # zero the wrapped-in left col
    nlc = (col < w - 1).astype(jnp.float32)    # zero the wrapped-in right col

    d = _boundary(pred, nfr, nlr, nfc, nlc) - _boundary(tgt, nfr, nlr, nfc, nlc)

    # Batch start of this grid step, computed from the UNCLAMPED block index so that
    # clamped duplicate blocks (parallel-axis round-up) mask to zero automatically.
    start = (c * pl.num_programs(1) + a) * bn
    is_full = start + bn <= n_total

    @pl.when(is_full)
    def _full_block():      # common path: no batch mask
        out_ref[...] += jnp.sum(d * d)

    @pl.when(jnp.logical_not(is_full))
    def _partial_block():   # remainder / duplicate block: mask batch rows >= n_total
        bidx = jax.lax.broadcasted_iota(jnp.int32, (bn, 1, 1), 0)
        bmask = (start + bidx < n_total).astype(jnp.float32)
        dm = d * bmask
        out_ref[...] += jnp.sum(dm * dm)


class BoundaryLoss:
    """JAX/Pallas port of nii_trainer BoundaryLoss (theta0/theta unused in forward)."""

    def __init__(self, theta0: float = 3.0, theta: float = 5.0):
        self.theta0 = theta0
        self.theta = theta

    def __call__(self, pred, target):
        # Accept NCHW (C must be 1, matching the PyTorch 1-in/1-out conv) or NHW.
        if pred.ndim == 4:
            N, C, H, W = pred.shape
            assert C == 1, "laplacian conv expects a single channel"
            p = pred.reshape(N * C, H, W)
            t = target.reshape(N * C, H, W)
        else:
            p, t = pred, target
        N, H, W = p.shape

        # Keep f32/bf16 in HBM as-is (cast in-kernel); cast everything else to f32.
        def _prep(x):
            if x.dtype in (jnp.float32, jnp.bfloat16):
                return x
            return x.astype(jnp.float32)

        p = _prep(p)
        t = _prep(t)

        # Generation-aware knobs (2 TensorCores + 64 MiB VMEM on v7x; 1 TC + 128 MiB else).
        try:
            kind = jax.devices()[0].device_kind.lower()
        except Exception:
            kind = ""
        is_v7 = "v7" in kind
        n_par = 2 if is_v7 else 1
        budget = (2 << 20) if is_v7 else (4 << 20)      # per-input f32 block budget
        vmem_limit = (48 << 20) if is_v7 else (64 << 20)

        # Whole images per grid step (no conv halo needed), sized to the f32 budget.
        img_f32_bytes = H * W * 4
        bn = max(1, min(N, 128, budget // max(1, img_f32_bytes)))

        nblocks = pl.cdiv(N, bn)
        n_arb = pl.cdiv(nblocks, n_par)

        # Clamp so parallel-axis round-up never DMAs out of bounds; the kernel masks the
        # (at most n_par-1) duplicate steps to zero via the batch mask.
        def in_map(ci, ai):
            return (jnp.minimum(ci * n_arb + ai, nblocks - 1), 0, 0)

        kernel = functools.partial(_boundary_loss_kernel, bn=bn, n_total=N)

        bytes_accessed = (p.size * p.dtype.itemsize + t.size * t.dtype.itemsize
                          + n_par * 8 * 128 * 4)
        cost = pl.CostEstimate(flops=30 * N * H * W, transcendentals=0,
                               bytes_accessed=bytes_accessed)

        partial_sums = pl.pallas_call(
            kernel,
            out_shape=jax.ShapeDtypeStruct((n_par, 8, 128), jnp.float32),
            grid_spec=pltpu.PrefetchScalarGridSpec(
                num_scalar_prefetch=0,
                grid=(n_par, n_arb),
                in_specs=[
                    pl.BlockSpec((bn, H, W), in_map),   # full H, W: allowed (== array dims)
                    pl.BlockSpec((bn, H, W), in_map),
                ],
                out_specs=pl.BlockSpec((1, 8, 128), lambda ci, ai: (ci, 0, 0)),
            ),
            compiler_params=pltpu.CompilerParams(
                dimension_semantics=("parallel", "arbitrary"),
                vmem_limit_bytes=vmem_limit,
            ),
            cost_estimate=cost,
        )(p, t)

        # Every element of a partial tile holds that slice's running sum; pick one per
        # parallel slice, combine, and divide by the exact element count.
        total = partial_sums[:, 0, 0].sum()
        return total / jnp.float32(N * H * W)


def _reference(pred, target):
    """Pure-JAX reference (conv via explicit shifts) for a sanity check."""
    def boundary(x):
        N, C, H, W = x.shape
        x3 = x.reshape(N * C, H, W)
        xp = jnp.pad(x3, ((0, 0), (1, 1), (1, 1)))
        box = jnp.zeros_like(x3)
        for di in range(3):
            for dj in range(3):
                box = box + xp[:, di:di + H, dj:dj + W]
        return jnp.abs(9.0 * x3 - box)

    pb = boundary(pred)
    tb = boundary(target)
    return jnp.mean((pb - tb) ** 2)


if __name__ == "__main__":
    key = jax.random.PRNGKey(0)
    k1, k2 = jax.random.split(key)

    N, C, H, W = 2, 1, 16, 16           # NCHW, single channel (required by the 3x3 laplacian conv)
    pred = jax.random.uniform(k1, (N, C, H, W), dtype=jnp.float32)
    target = (jax.random.uniform(k2, (N, C, H, W)) > 0.5).astype(jnp.float32)

    loss_fn = BoundaryLoss()
    loss = loss_fn(pred, target)
    jax.block_until_ready(loss)

    ref = _reference(pred, target)
    assert jnp.allclose(loss, ref, rtol=1e-5, atol=1e-5), (loss, ref)

    print("KERNEL_OK")
</pallas_src>

<mosaic_0001>
module attributes {stable_mosaic.version = 11 : i64} {
  func.func @_boundary_loss_kernel(%arg0: i32, %arg1: i32, %arg2: memref<2x16x16xf32, #tpu.memory_space<vmem>>, %arg3: memref<2x16x16xf32, #tpu.memory_space<vmem>>, %arg4: memref<1x8x128xf32, #tpu.memory_space<vmem>>) attributes {dimension_semantics = [#tpu.dimension_semantics<parallel>, #tpu.dimension_semantics<arbitrary>], iteration_bounds = array<i64: 1, 1>, scalar_prefetch = 0 : i64, scratch_operands = 0 : i64, tpu.core_type = #tpu.core_type<tc>, window_params = [{transform_indices = @transform_0, window_bounds = array<i64: 2, 16, 16>}, {transform_indices = @transform_1, window_bounds = array<i64: 2, 16, 16>}, {transform_indices = @transform_2, window_bounds = array<i64: 1, 8, 128>}]} {
    %c0_i32 = arith.constant 0 : i32
    %0 = arith.cmpi eq, %arg1, %c0_i32 : i32
    %1 = arith.extui %0 : i1 to i32
    %c0_i32_0 = arith.constant 0 : i32
    %2 = arith.cmpi ne, %1, %c0_i32_0 : i32
    scf.if %2 {
      %cst_22 = arith.constant 0.000000e+00 : f32
      %74 = vector.broadcast %cst_22 : f32 to vector<1x8x128xf32>
      %c0_23 = arith.constant 0 : index
      %c0_24 = arith.constant 0 : index
      %c0_25 = arith.constant 0 : index
      %75 = vector.load %arg4[%c0_23, %c0_24, %c0_25] : memref<1x8x128xf32, #tpu.memory_space<vmem>>, vector<1x8x128xf32>
      tpu.vector_store %arg4[%c0_23, %c0_24, %c0_25], %74 {strides = array<i32>} : memref<1x8x128xf32, #tpu.memory_space<vmem>>, vector<1x8x128xf32>,
    } else {
    }
    %c0 = arith.constant 0 : index
    %c0_1 = arith.constant 0 : index
    %c0_2 = arith.constant 0 : index
    %3 = vector.load %arg2[%c0, %c0_1, %c0_2] : memref<2x16x16xf32, #tpu.memory_space<vmem>>, vector<2x16x16xf32>
    %c0_3 = arith.constant 0 : index
    %c0_4 = arith.constant 0 : index
    %c0_5 = arith.constant 0 : index
    %4 = vector.load %arg3[%c0_3, %c0_4, %c0_5] : memref<2x16x16xf32, #tpu.memory_space<vmem>>, vector<2x16x16xf32>
    %5 = tpu.iota {dimensions = array<i32: 1>} : vector<1x16x1xi32>
    %6 = tpu.iota {dimensions = array<i32: 2>} : vector<1x1x16xi32>
    %c0_i32_6 = arith.constant 0 : i32
    %7 = vector.broadcast %c0_i32_6 : i32 to vector<1x16x1xi32>
    %8 = arith.cmpi sgt, %5, %7 : vector<1x16x1xi32>
    %9 = arith.extui %8 : vector<1x16x1xi1> to vector<1x16x1xi32>
    %10 = arith.sitofp %9 : vector<1x16x1xi32> to vector<1x16x1xf32>
    %c15_i32 = arith.constant 15 : i32
    %11 = vector.broadcast %c15_i32 : i32 to vector<1x16x1xi32>
    %12 = arith.cmpi slt, %5, %11 : vector<1x16x1xi32>
    %13 = arith.extui %12 : vector<1x16x1xi1> to vector<1x16x1xi32>
    %14 = arith.sitofp %13 : vector<1x16x1xi32> to vector<1x16x1xf32>
    %c0_i32_7 = arith.constant 0 : i32
    %15 = vector.broadcast %c0_i32_7 : i32 to vector<1x1x16xi32>
    %16 = arith.cmpi sgt, %6, %15 : vector<1x1x16xi32>
    %17 = arith.extui %16 : vector<1x1x16xi1> to vector<1x1x16xi32>
    %18 = arith.sitofp %17 : vector<1x1x16xi32> to vector<1x1x16xf32>
    %c15_i32_8 = arith.constant 15 : i32
    %19 = vector.broadcast %c15_i32_8 : i32 to vector<1x1x16xi32>
    %20 = arith.cmpi slt, %6, %19 : vector<1x1x16xi32>
    %21 = arith.extui %20 : vector<1x1x16xi1> to vector<1x1x16xi32>
    %22 = arith.sitofp %21 : vector<1x1x16xi32> to vector<1x1x16xf32>
    %c1_i32 = arith.constant 1 : i32
    %23 = tpu.dynamic_rotate %3 by %c1_i32 dim 2 : vector<2x16x16xf32>, i32 -> vector<2x16x16xf32>
    %24 = vector.broadcast %18 : vector<1x1x16xf32> to vector<2x16x16xf32>
    %25 = arith.mulf %23, %24 : vector<2x16x16xf32>
    %26 = arith.addf %3, %25 : vector<2x16x16xf32>
    %c15_i32_9 = arith.constant 15 : i32
    %27 = tpu.dynamic_rotate %3 by %c15_i32_9 dim 2 : vector<2x16x16xf32>, i32 -> vector<2x16x16xf32>
    %28 = vector.broadcast %22 : vector<1x1x16xf32> to vector<2x16x16xf32>
    %29 = arith.mulf %27, %28 : vector<2x16x16xf32>
    %30 = arith.addf %26, %29 : vector<2x16x16xf32>
    %c1_i32_10 = arith.constant 1 : i32
    %31 = tpu.dynamic_rotate %30 by %c1_i32_10 dim 1 : vector<2x16x16xf32>, i32 -> vector<2x16x16xf32>
    %32 = vector.broadcast %10 : vector<1x16x1xf32> to vector<2x16x16xf32>
    %33 = arith.mulf %31, %32 : vector<2x16x16xf32>
    %34 = arith.addf %30, %33 : vector<2x16x16xf32>
    %c15_i32_11 = arith.constant 15 : i32
    %35 = tpu.dynamic_rotate %30 by %c15_i32_11 dim 1 : vector<2x16x16xf32>, i32 -> vector<2x16x16xf32>
    %36 = vector.broadcast %14 : vector<1x16x1xf32> to vector<2x16x16xf32>
    %37 = arith.mulf %35, %36 : vector<2x16x16xf32>
    %38 = arith.addf %34, %37 : vector<2x16x16xf32>
    %cst = arith.constant 9.000000e+00 : f32
    %39 = vector.broadcast %cst : f32 to vector<2x16x16xf32>
    %40 = arith.mulf %39, %3 : vector<2x16x16xf32>
    %41 = arith.subf %40, %38 : vector<2x16x16xf32>
    %42 = math.absf %41 : vector<2x16x16xf32>
    %c1_i32_12 = arith.constant 1 : i32
    %43 = tpu.dynamic_rotate %4 by %c1_i32_12 dim 2 : vector<2x16x16xf32>, i32 -> vector<2x16x16xf32>
    %44 = vector.broadcast %18 : vector<1x1x16xf32> to vector<2x16x16xf32>
    %45 = arith.mulf %43, %44 : vector<2x16x16xf32>
    %46 = arith.addf %4, %45 : vector<2x16x16xf32>
    %c15_i32_13 = arith.constant 15 : i32
    %47 = tpu.dynamic_rotate %4 by %c15_i32_13 dim 2 : vector<2x16x16xf32>, i32 -> vector<2x16x16xf32>
    %48 = vector.broadcast %22 : vector<1x1x16xf32> to vector<2x16x16xf32>
    %49 = arith.mulf %47, %48 : vector<2x16x16xf32>
    %50 = arith.addf %46, %49 : vector<2x16x16xf32>
    %c1_i32_14 = arith.constant 1 : i32
    %51 = tpu.dynamic_rotate %50 by %c1_i32_14 dim 1 : vector<2x16x16xf32>, i32 -> vector<2x16x16xf32>
    %52 = vector.broadcast %10 : vector<1x16x1xf32> to vector<2x16x16xf32>
    %53 = arith.mulf %51, %52 : vector<2x16x16xf32>
    %54 = arith.addf %50, %53 : vector<2x16x16xf32>
    %c15_i32_15 = arith.constant 15 : i32
    %55 = tpu.dynamic_rotate %50 by %c15_i32_15 dim 1 : vector<2x16x16xf32>, i32 -> vector<2x16x16xf32>
    %56 = vector.broadcast %14 : vector<1x16x1xf32> to vector<2x16x16xf32>
    %57 = arith.mulf %55, %56 : vector<2x16x16xf32>
    %58 = arith.addf %54, %57 : vector<2x16x16xf32>
    %cst_16 = arith.constant 9.000000e+00 : f32
    %59 = vector.broadcast %cst_16 : f32 to vector<2x16x16xf32>
    %60 = arith.mulf %59, %4 : vector<2x16x16xf32>
    %61 = arith.subf %60, %58 : vector<2x16x16xf32>
    %62 = math.absf %61 : vector<2x16x16xf32>
    %63 = arith.subf %42, %62 : vector<2x16x16xf32>
    %c1_i32_17 = arith.constant 1 : i32
    %64 = arith.muli %arg0, %c1_i32_17 : i32
    %65 = arith.addi %64, %arg1 : i32
    %c2_i32 = arith.constant 2 : i32
    %66 = arith.muli %65, %c2_i32 : i32
    %c2_i32_18 = arith.constant 2 : i32
    %67 = arith.addi %66, %c2_i32_18 : i32
    %c2_i32_19 = arith.constant 2 : i32
    %68 = arith.cmpi sle, %67, %c2_i32_19 : i32
    %69 = arith.extui %68 : i1 to i32
    %c0_i32_20 = arith.constant 0 : i32
    %70 = arith.cmpi ne, %69, %c0_i32_20 : i32
    scf.if %70 {
      %c0_22 = arith.constant 0 : index
      %c0_23 = arith.constant 0 : index
      %c0_24 = arith.constant 0 : index
      %74 = vector.load %arg4[%c0_22, %c0_23, %c0_24] : memref<1x8x128xf32, #tpu.memory_space<vmem>>, vector<1x8x128xf32>
      %75 = arith.mulf %63, %63 : vector<2x16x16xf32>
      %76 = vector.shape_cast %75 : vector<2x16x16xf32> to vector<1x2x16x16xf32>
      %cst_25 = arith.constant dense<0.000000e+00> : vector<1xf32>
      %77 = vector.multi_reduction <add>, %76, %cst_25 [1, 2, 3] : vector<1x2x16x16xf32> to vector<1xf32>
      %78 = vector.shape_cast %77 : vector<1xf32> to vector<1x1x1x1xf32>
      %79 = vector.extract %78[0, 0, 0, 0] : f32 from vector<1x1x1x1xf32>
      %80 = vector.broadcast %79 : f32 to vector<1x8x128xf32>
      %81 = arith.addf %74, %80 : vector<1x8x128xf32>
      %c0_26 = arith.constant 0 : index
      %c0_27 = arith.constant 0 : index
      %c0_28 = arith.constant 0 : index
      %82 = vector.load %arg4[%c0_26, %c0_27, %c0_28] : memref<1x8x128xf32, #tpu.memory_space<vmem>>, vector<1x8x128xf32>
      tpu.vector_store %arg4[%c0_26, %c0_27, %c0_28], %81 {strides = array<i32>} : memref<1x8x128xf32, #tpu.memory_space<vmem>>, vector<1x8x128xf32>,
    } else {
    }
    %true = arith.constant true
    %71 = arith.xori %68, %true : i1
    %72 = arith.extui %71 : i1 to i32
    %c0_i32_21 = arith.constant 0 : i32
    %73 = arith.cmpi ne, %72, %c0_i32_21 : i32
    scf.if %73 {
      %74 = tpu.iota {dimensions = array<i32: 0>} : vector<2x1x1xi32>
      %75 = vector.broadcast %66 : i32 to vector<2x1x1xi32>
      %76 = arith.addi %75, %74 : vector<2x1x1xi32>
      %c2_i32_22 = arith.constant 2 : i32
      %77 = vector.broadcast %c2_i32_22 : i32 to vector<2x1x1xi32>
      %78 = arith.cmpi slt, %76, %77 : vector<2x1x1xi32>
      %79 = arith.extui %78 : vector<2x1x1xi1> to vector<2x1x1xi32>
      %80 = arith.sitofp %79 : vector<2x1x1xi32> to vector<2x1x1xf32>
      %81 = vector.broadcast %80 : vector<2x1x1xf32> to vector<2x16x16xf32>
      %82 = arith.mulf %63, %81 : vector<2x16x16xf32>
      %c0_23 = arith.constant 0 : index
      %c0_24 = arith.constant 0 : index
      %c0_25 = arith.constant 0 : index
      %83 = vector.load %arg4[%c0_23, %c0_24, %c0_25] : memref<1x8x128xf32, #tpu.memory_space<vmem>>, vector<1x8x128xf32>
      %84 = arith.mulf %82, %82 : vector<2x16x16xf32>
      %85 = vector.shape_cast %84 : vector<2x16x16xf32> to vector<1x2x16x16xf32>
      %cst_26 = arith.constant dense<0.000000e+00> : vector<1xf32>
      %86 = vector.multi_reduction <add>, %85, %cst_26 [1, 2, 3] : vector<1x2x16x16xf32> to vector<1xf32>
      %87 = vector.shape_cast %86 : vector<1xf32> to vector<1x1x1x1xf32>
      %88 = vector.extract %87[0, 0, 0, 0] : f32 from vector<1x1x1x1xf32>
      %89 = vector.broadcast %88 : f32 to vector<1x8x128xf32>
      %90 = arith.addf %83, %89 : vector<1x8x128xf32>
      %c0_27 = arith.constant 0 : index
      %c0_28 = arith.constant 0 : index
      %c0_29 = arith.constant 0 : index
      %91 = vector.load %arg4[%c0_27, %c0_28, %c0_29] : memref<1x8x128xf32, #tpu.memory_space<vmem>>, vector<1x8x128xf32>
      tpu.vector_store %arg4[%c0_27, %c0_28, %c0_29], %90 {strides = array<i32>} : memref<1x8x128xf32, #tpu.memory_space<vmem>>, vector<1x8x128xf32>,
    } else {
    }
    return
  }
  func.func @transform_0(%arg0: i32, %arg1: i32) -> (i32, i32, i32) {
    %c1_i32 = arith.constant 1 : i32
    %0 = arith.muli %arg0, %c1_i32 : i32
    %1 = arith.addi %0, %arg1 : i32
    %c0_i32 = arith.constant 0 : i32
    %2 = arith.minsi %1, %c0_i32 : i32
    %c0_i32_0 = arith.constant 0 : i32
    %c0_i32_1 = arith.constant 0 : i32
    %c0_i32_2 = arith.constant 0 : i32
    return %2, %c0_i32_0, %c0_i32_1 : i32, i32, i32
  }
  func.func @transform_1(%arg0: i32, %arg1: i32) -> (i32, i32, i32) {
    %c1_i32 = arith.constant 1 : i32
    %0 = arith.muli %arg0, %c1_i32 : i32
    %1 = arith.addi %0, %arg1 : i32
    %c0_i32 = arith.constant 0 : i32
    %2 = arith.minsi %1, %c0_i32 : i32
    %c0_i32_0 = arith.constant 0 : i32
    %c0_i32_1 = arith.constant 0 : i32
    %c0_i32_2 = arith.constant 0 : i32
    return %2, %c0_i32_0, %c0_i32_1 : i32, i32, i32
  }
  func.func @transform_2(%arg0: i32, %arg1: i32) -> (i32, i32, i32) {
    %c0_i32 = arith.constant 0 : i32
    %c0_i32_0 = arith.constant 0 : i32
    %c0_i32_1 = arith.constant 0 : i32
    return %arg0, %c0_i32, %c0_i32_0 : i32, i32, i32
  }
}

</mosaic_0001>

<bundles_post_ra>
// kernel: tpu_custom_call.1
= control target key start
LH: loop header
LB: loop body
LE: loop exit
PB: predicated region body
PF: predicated region fallthrough
CT: control target
= control target key end

     0   :  { %7 = vsyncpa [#allocation3], 0  ;;  %s756_s0 = inlined_call_operand.hbm [shape: f32[2,16,16], index: 0, kind: input, shape index: {}]   ;;  %s757_s1 = inlined_call_operand.hbm [shape: f32[2,16,16], index: 1, kind: input, shape index: {}]   ;;  %s758_s2 = inlined_call_operand.hbm [shape: f32[1,8,128], index: 2, kind: output, shape index: {}]  }
   0x1   :  { %8 = vsyncpa [#allocation6], 0 }
   0x2   :  { %9 = vsyncpa [#allocation4], 0  ;;  %s527_s9 = smov [#allocation2]   ;;  %s455_s13 = scalar_lea.hbm %s756_s0, 512 }
   0x3   :  { %s22_s10 = sshll.u32 %s527_s9, 4  ;;  %p456_p0 = scmp.ne.s32.totalorder %s756_s0, %s455_s13  ;;  %s23_s10 = int_to_ptr.vmem [resolvable:$true] %s22_s10 }
   0x4   :  { %p459_p1 = scmp.lt.u32.totalorder %s455_s13, %s756_s0 }
   0x6   :  { %p461_p2 = pnand %p459_p1, %p456_p0 }
   0x8   :  { %464 = shalt.err (!%p461_p2)
}
   0x9   :  { %s465_s18 = scalar_lea.vmem %s23_s10, 512  ;;  %p470_p4 = scmp.lt.s32.totalorder %s23_s10, %s23_s10 }
   0xa   :  { %p466_p3 = scmp.ne.s32.totalorder %s23_s10, %s465_s18  ;;  %p471_p5 = scmp.lt.s32.totalorder %s465_s18, %s465_s18 }
   0xc   :  { %p472_p6 = por %p471_p5, %p470_p4 }
   0xe   :  { %p473_p7 = pnand %p472_p6, %p466_p3 }
  0x10   :  { %476 = shalt.err (!%p473_p7)
}
  0x11   :  { %s528_s19 = smov 128   ;;  %s529_s20 = smov 8  }
  0x12   :  { %28 = dma.hbm_to_vmem [thread:$0]  %s756_s0, 512, %s23_s10, [#allocation3], %s528_s19, %s528_s19, %s529_s20  }
  0x13   :  { %s530_s23 = smov [#allocation5]   ;;  %s477_s27 = scalar_lea.hbm %s757_s1, 512 }
  0x14   :  { %s41_s24 = sshll.u32 %s530_s23, 4  ;;  %p478_p8 = scmp.ne.s32.totalorder %s757_s1, %s477_s27  ;;  %s42_s24 = int_to_ptr.vmem [resolvable:$true] %s41_s24 }
  0x15   :  { %p481_p9 = scmp.lt.u32.totalorder %s477_s27, %s757_s1 }
  0x17   :  { %p483_p10 = pnand %p481_p9, %p478_p8 }
  0x19   :  { %486 = shalt.err (!%p483_p10)
}
  0x1a   :  { %s487_s4 = scalar_lea.vmem %s42_s24, 512  ;;  %p492_p12 = scmp.lt.s32.totalorder %s42_s24, %s42_s24 }
  0x1b   :  { %p488_p11 = scmp.ne.s32.totalorder %s42_s24, %s487_s4  ;;  %p493_p13 = scmp.lt.s32.totalorder %s487_s4, %s487_s4 }
  0x1d   :  { %p494_p0 = por %p493_p13, %p492_p12 }
  0x1f   :  { %p495_p1 = pnand %p494_p0, %p488_p11 }
  0x21   :  { %498 = shalt.err (!%p495_p1)
}
  0x22   :  { %47 = dma.hbm_to_vmem [thread:$0]  %s757_s1, 512, %s42_s24, [#allocation6], %s528_s19, %s528_s19, %s529_s20  }
  0x23   :  { %521 = dma.done.wait [#allocation3], 512  }
  0x24   :  { %522 = vsyncadd [#allocation3], 4294966784 }
  0x25   :  { %523 = dma.done.wait [#allocation6], 512  }
  0x26   :  { %524 = vsyncadd [#allocation6], 4294966784  ;;  %v577_v0 = vld [vmem:[#allocation5] sm:$0xff]  ;;  %s531_s6 = smov 16   ;;  %v585_v2 = vld [vmem:[#allocation5 + $0x8] sm:$0xff]  ;;  %v75_v4 = vlaneseq  ;;  %v532_v10 = vmov 0.0  }
  0x27   :  { %v579_v1 = vld [vmem:[#allocation2] sm:$0xff]  ;;  %225 = vrot.lane.b32.xlu1 %v577_v0, %s531_s6  ;;  %v587_v3 = vld [vmem:[#allocation2 + $0x8] sm:$0xff]  ;;  %v593_v5 = vld [vmem:[#allocation2 + $0x18] sm:$0xff]  ;;  %s533_s1 = smov 15   ;;  %vm98_vm1 = vcmask 1047680   ;;  %s534_s7 = smov 1  }
  0x28   :  { %99 = vrot.lane.b32.xlu0 %v579_v1, %s531_s6  ;;  %v595_v6 = vld [vmem:[#allocation2 + $0x10] sm:$0xff]  ;;  %v79_v7 = vand.u32 127, %v75_v4  ;;  %v602_v8 = vld [vmem:[#allocation5 + $0x18] sm:$0xff]  ;;  %s535_s8 = smov 113   ;;  %s536_s9 = smov 127   ;;  %vm357_vm7 = vcmask 130048  }
  0x29   :  { %v604_v9 = vld [vmem:[#allocation5 + $0x10] sm:$0xff]  ;;  %s537_s10 = smov [#allocation7]  }
  0x2a   :  { %vm92_vm0 = vcmp.gt.s32.totalorder %v79_v7, 0  ;;  %vm95_vm2 = vcmp.lt.s32.totalorder %v79_v7, 15  ;;  %s424_s11 = sshll.u32 %s537_s10, 4  ;;  %s425_s11 = int_to_ptr.vmem [resolvable:$true] %s424_s11 }
  0x2b   :  { %228 = vrot.lane.b32.xlu1 %v585_v2, %s531_s6  ;;  %v440_v11 = vsel %vm92_vm0, 1.0, %v532_v10  ;;  %v441_v28 = vsel %vm95_vm2, 1.0, %v532_v10  ;;  %s499_s13 = scalar_lea.vmem %s425_s11, 128  ;;  %p504_p3 = scmp.lt.s32.totalorder %s425_s11, %s425_s11 }
  0x2c   :  { %102 = vrot.lane.b32.xlu0 %v587_v3, %s531_s6  ;;  %p500_p2 = scmp.ne.s32.totalorder %s425_s11, %s499_s13  ;;  %p505_p4 = scmp.lt.s32.totalorder %s499_s13, %s499_s13 }
  0x2e   :  { %p506_p5 = por %p505_p4, %p504_p3 }
  0x2f   :  { %108 = vrot.lane.b32.xlu1 %v593_v5, %s531_s6 }
  0x30   :  { %105 = vrot.lane.b32.xlu0 %v595_v6, %s531_s6  ;;  %p507_p6 = pnand %p506_p5, %p500_p2 }
  0x33   :  { %234 = vrot.lane.b32.xlu1 %v602_v8, %s531_s6 }
  0x34   :  { %231 = vrot.lane.b32.xlu0 %v604_v9, %s531_s6 }
  0x38   :  { %124 = vrot.lane.b32.xlu0 %v440_v11, %s533_s1 }
  0x99   :  { %v226_v12 = vpop.permute.xlu1 %225 }
  0x9a   :  { %v100_v13 = vpop.permute.xlu0 %99  ;;  %v227_v15 = vsel %vm98_vm1, %v226_v12, %v577_v0 }
  0x9b   :  { %v101_v14 = vsel %vm98_vm1, %v100_v13, %v579_v1  ;;  %v661_v13 = vshrl.u32 %v75_v4, 7 }
  0x9c   :  { %111 = vrot.lane.b32.xlu0 %v101_v14, %s531_s6 }
  0x9d   :  { %v229_v16 = vpop.permute.xlu1 %228  ;;  %vm80_vm3 = vcmp.gt.s32.totalorder %v661_v13, 0  ;;  %vm183_vm5 = vcmp.lt.s32.totalorder %v661_v13, 1  ;;  %vm200_vm6 = vcmp.lt.s32.totalorder %v661_v13, 7 }
  0x9e   :  { %v103_v17 = vpop.permute.xlu0 %102  ;;  %v230_v19 = vsel %vm98_vm1, %v229_v16, %v585_v2  ;;  %v77_v16 = vadd.s32 8, %v661_v13  ;;  %v670_v4 = vsel %vm80_vm3, 1.0, %v532_v10 }
  0x9f   :  { %v104_v18 = vsel %vm98_vm1, %v103_v17, %v587_v3 }
  0xa0   :  { %237 = vrot.lane.b32.xlu0 %v227_v15, %s531_s6  ;;  %113 = vrot.lane.b32.xlu1 %v104_v18, %s531_s6  ;;  %vm87_vm4 = vcmp.lt.s32.totalorder %v77_v16, 15 }
  0xa1   :  { %v109_v20 = vpop.permute.xlu1 %108 }
  0xa2   :  { %v106_v21 = vpop.permute.xlu0 %105  ;;  %v110_v22 = vsel %vm98_vm1, %v109_v20, %v593_v5 }
  0xa3   :  { %v107_v23 = vsel %vm98_vm1, %v106_v21, %v595_v6 }
  0xa4   :  { %117 = vrot.lane.b32.xlu0 %v110_v22, %s531_s6  ;;  %239 = vrot.lane.b32.xlu1 %v230_v19, %s531_s6 }
  0xa5   :  { %v235_v24 = vpop.permute.xlu1 %234 }
  0xa6   :  { %v232_v25 = vpop.permute.xlu0 %231  ;;  %v236_v26 = vsel %vm98_vm1, %v235_v24, %v602_v8 }
  0xa7   :  { %v233_v27 = vsel %vm98_vm1, %v232_v25, %v604_v9 }
  0xa8   :  { %243 = vrot.lane.b32.xlu0 %v236_v26, %s531_s6  ;;  %115 = vrot.lane.b32.xlu1 %v107_v23, %s531_s6 }
  0xaa   :  { %v125_v29 = vpop.permute.xlu0 %124 }
  0xac   :  { %241 = vrot.lane.b32.xlu1 %v233_v27, %s531_s6 }
  0xb0   :  { %152 = vrot.lane.b32.xlu1 %v441_v28, %s534_s7 }
 0x10e   :  { %v112_v30 = vpop.permute.xlu0 %111 }
 0x10f   :  { %v119_v31 = vsel %vm98_vm1, %v112_v30, %v579_v1 }
 0x110   :  { %v127_v32 = vmul.f32 %v125_v29, %v119_v31 }
 0x112   :  { %v114_v33 = vpop.permute.xlu1 %113  ;;  %135 = vrot.lane.b32.xlu0 %v127_v32, %s535_s8  ;;  %v238_v34 = vpop.permute.xlu0 %237 }
 0x113   :  { %v120_v35 = vsel %vm98_vm1, %v114_v33, %v587_v3  ;;  %v245_v36 = vsel %vm98_vm1, %v238_v34, %v577_v0 }
 0x114   :  { %v128_v37 = vmul.f32 %v125_v29, %v120_v35  ;;  %v249_v38 = vmul.f32 %v245_v36, %v125_v29 }
 0x116   :  { %v240_v39 = vpop.permute.xlu1 %239  ;;  %137 = vrot.lane.b32.xlu1 %v128_v37, %s535_s8  ;;  %257 = vrot.lane.b32.xlu0 %v249_v38, %s535_s8  ;;  %v118_v40 = vpop.permute.xlu0 %117 }
 0x117   :  { %v246_v41 = vsel %vm98_vm1, %v240_v39, %v585_v2  ;;  %v122_v43 = vsel %vm98_vm1, %v118_v40, %v593_v5 }
 0x118   :  { %v250_v42 = vmul.f32 %v246_v41, %v125_v29  ;;  %v130_v46 = vmul.f32 %v125_v29, %v122_v43 }
 0x11a   :  { %v116_v44 = vpop.permute.xlu1 %115  ;;  %259 = vrot.lane.b32.xlu1 %v250_v42, %s535_s8  ;;  %v244_v49 = vpop.permute.xlu0 %243 }
 0x11b   :  { %v121_v45 = vsel %vm98_vm1, %v116_v44, %v595_v6  ;;  %v248_v53 = vsel %vm98_vm1, %v244_v49, %v602_v8 }
 0x11c   :  { %v129_v47 = vmul.f32 %v125_v29, %v121_v45  ;;  %v252_v55 = vmul.f32 %v248_v53, %v125_v29 }
 0x11e   :  { %v242_v48 = vpop.permute.xlu1 %241  ;;  %139 = vrot.lane.b32.xlu0 %v129_v47, %s535_s8  ;;  %141 = vrot.lane.b32.xlu1 %v130_v46, %s535_s8  ;;  %v213_v46 = vmul.f32 9.0, %v579_v1  ;;  %v696_v47 = vmul.f32 9.0, %v595_v6 }
 0x11f   :  { %v247_v54 = vsel %vm98_vm1, %v242_v48, %v604_v9 }
 0x120   :  { %v251_v56 = vmul.f32 %v247_v54, %v125_v29  ;;  %v673_v29 = vsel %vm87_vm4, 1.0, %v532_v10 }
 0x122   :  { %v153_v50 = vpop.permute.xlu1 %152 }
 0x123   :  { %v155_v51 = vmul.f32 %v153_v50, %v119_v31  ;;  %v156_v52 = vmul.f32 %v153_v50, %v120_v35  ;;  %v273_v57 = vmul.f32 %v245_v36, %v153_v50  ;;  %v274_v58 = vmul.f32 %v246_v41, %v153_v50 }
 0x124   :  { %v157_v59 = vmul.f32 %v153_v50, %v121_v45  ;;  %v158_v60 = vmul.f32 %v153_v50, %v122_v43  ;;  %v275_v61 = vmul.f32 %v247_v54, %v153_v50  ;;  %v276_v62 = vmul.f32 %v248_v53, %v153_v50 }
 0x125   :  { %163 = vrot.lane.b32.xlu0 %v155_v51, %s536_s9  ;;  %165 = vrot.lane.b32.xlu1 %v156_v52, %s536_s9  ;;  %v685_v36 = vmul.f32 9.0, %v585_v2  ;;  %v689_v41 = vmul.f32 9.0, %v587_v3 }
 0x129   :  { %261 = vrot.lane.b32.xlu0 %v251_v56, %s535_s8  ;;  %263 = vrot.lane.b32.xlu1 %v252_v55, %s535_s8  ;;  %v700_v55 = vmul.f32 9.0, %v593_v5  ;;  %v703_v56 = vmul.f32 9.0, %v602_v8 }
 0x12d   :  { %281 = vrot.lane.b32.xlu0 %v273_v57, %s536_s9  ;;  %283 = vrot.lane.b32.xlu1 %v274_v58, %s536_s9 }
 0x131   :  { %167 = vrot.lane.b32.xlu0 %v157_v59, %s536_s9  ;;  %169 = vrot.lane.b32.xlu1 %v158_v60, %s536_s9 }
 0x135   :  { %285 = vrot.lane.b32.xlu0 %v275_v61, %s536_s9  ;;  %287 = vrot.lane.b32.xlu1 %v276_v62, %s536_s9 }
 0x184   :  { %v136_v7 = vpop.permute.xlu0 %135 }
 0x185   :  { %v147_v17 = vadd.f32 %v136_v7, %v579_v1 }
 0x188   :  { %v138_v63 = vpop.permute.xlu1 %137  ;;  %v258_v12 = vpop.permute.xlu0 %257 }
 0x189   :  { %v148_v18 = vadd.f32 %v138_v63, %v587_v3  ;;  %v269_v34 = vadd.f32 %v258_v12, %v577_v0 }
 0x18c   :  { %v260_v11 = vpop.permute.xlu1 %259 }
 0x18d   :  { %v270_v35 = vadd.f32 %v260_v11, %v585_v2  ;;  %v329_v2 = vmul.f32 9.0, %v577_v0 }
 0x190   :  { %v142_v14 = vpop.permute.xlu1 %141  ;;  %v140_v15 = vpop.permute.xlu0 %139 }
 0x191   :  { %v150_v3 = vadd.f32 %v142_v14, %v593_v5  ;;  %v149_v0 = vadd.f32 %v140_v15, %v595_v6 }
 0x197   :  { %v166_v19 = vpop.permute.xlu1 %165  ;;  %v164_v20 = vpop.permute.xlu0 %163 }
 0x198   :  { %v176_v21 = vadd.f32 %v166_v19, %v148_v18  ;;  %v175_v22 = vadd.f32 %v164_v20, %v147_v17 }
 0x19a   :  { %v181_v23 = vrot.slane %v176_v21, 7  ;;  %v198_v24 = vrot.slane %v176_v21, 1  ;;  %v179_v25 = vrot.slane %v175_v22, 7  ;;  %v196_v26 = vrot.slane %v175_v22, 1 }
 0x19b   :  { %v264_v27 = vpop.permute.xlu1 %263  ;;  %v262_v28 = vpop.permute.xlu0 %261 }
 0x19c   :  { %v184_v30 = vsel %vm183_vm5, %v179_v25, %v181_v23  ;;  %v186_v31 = vsel %vm183_vm5, %v181_v23, %v179_v25  ;;  %v203_v32 = vsel %vm200_vm6, %v198_v24, %v196_v26  ;;  %v201_v42 = vsel %vm200_vm6, %v196_v26, %v198_v24 }
 0x19d   :  { %v188_v33 = vmul.f32 %v670_v4, %v186_v31  ;;  %v193_v37 = vadd.f32 %v184_v30, %v176_v21  ;;  %v206_v38 = vmul.f32 %v673_v29, %v203_v32  ;;  %v272_v62 = vadd.f32 %v264_v27, %v602_v8 }
 0x19e   :  { %v271_v63 = vadd.f32 %v262_v28, %v604_v9 }
 0x19f   :  { %v192_v10 = vadd.f32 %v188_v33, %v175_v22  ;;  %v284_v39 = vpop.permute.xlu1 %283  ;;  %v282_v40 = vpop.permute.xlu0 %281  ;;  %v210_v52 = vadd.f32 %v206_v38, %v193_v37 }
 0x1a0   :  { %v294_v43 = vadd.f32 %v284_v39, %v270_v35  ;;  %v293_v44 = vadd.f32 %v282_v40, %v269_v34 }
 0x1a1   :  { %v209_v45 = vadd.f32 %v201_v42, %v192_v10  ;;  %v218_v17 = vsub.f32 %v689_v41, %v210_v52 }
 0x1a2   :  { %v299_v48 = vrot.slane %v294_v43, 7  ;;  %v315_v49 = vrot.slane %v294_v43, 1  ;;  %v297_v50 = vrot.slane %v293_v44, 7  ;;  %v313_v51 = vrot.slane %v293_v44, 1 }
 0x1a3   :  { %v170_v53 = vpop.permute.xlu1 %169  ;;  %v168_v54 = vpop.permute.xlu0 %167  ;;  %v217_v59 = vsub.f32 %v213_v46, %v209_v45 }
 0x1a4   :  { %v301_v1 = vsel %vm183_vm5, %v297_v50, %v299_v48  ;;  %v303_v57 = vsel %vm183_vm5, %v299_v48, %v297_v50  ;;  %v319_v58 = vsel %vm200_vm6, %v315_v49, %v313_v51  ;;  %v178_v6 = vadd.f32 %v170_v53, %v150_v3 }
 0x1a5   :  { %v305_v60 = vmul.f32 %v670_v4, %v303_v57  ;;  %v310_v61 = vadd.f32 %v301_v1, %v294_v43  ;;  %v322_v5 = vmul.f32 %v673_v29, %v319_v58  ;;  %v177_v7 = vadd.f32 %v168_v54, %v149_v0 }
 0x1a6   :  { %v317_v12 = vsel %vm200_vm6, %v313_v51, %v315_v49  ;;  %v182_v18 = vrot.slane %v178_v6, 7  ;;  %v199_v19 = vrot.slane %v178_v6, 1  ;;  %v221_v22 = vand.u32 2147483647, %v217_v59 }
 0x1a7   :  { %v309_v11 = vadd.f32 %v305_v60, %v293_v44  ;;  %v326_v14 = vadd.f32 %v322_v5, %v310_v61  ;;  %v288_v15 = vpop.permute.xlu1 %287  ;;  %v286_v16 = vpop.permute.xlu0 %285  ;;  %v180_v20 = vrot.slane %v177_v7, 7  ;;  %v197_v21 = vrot.slane %v177_v7, 1 }
 0x1a8   :  { %v296_v8 = vadd.f32 %v288_v15, %v272_v62  ;;  %v295_v24 = vadd.f32 %v286_v16, %v271_v63  ;;  %v331_v49 = vmul.f32 9.0, %v604_v9  ;;  %v222_v50 = vand.u32 2147483647, %v218_v17 }
 0x1a9   :  { %v325_v23 = vadd.f32 %v317_v12, %v309_v11  ;;  %v185_v25 = vsel %vm183_vm5, %v180_v20, %v182_v18  ;;  %v187_v26 = vsel %vm183_vm5, %v182_v18, %v180_v20  ;;  %v204_v27 = vsel %vm200_vm6, %v199_v19, %v197_v21 }
 0x1aa   :  { %v334_v28 = vsub.f32 %v685_v36, %v326_v14  ;;  %v190_v31 = vmul.f32 %v670_v4, %v187_v26  ;;  %v195_v32 = vadd.f32 %v185_v25, %v178_v6  ;;  %v208_v33 = vmul.f32 %v673_v29, %v204_v27 }
 0x1ab   :  { %v333_v30 = vsub.f32 %v329_v2, %v325_v23  ;;  %v300_v34 = vrot.slane %v296_v8, 7  ;;  %v316_v35 = vrot.slane %v296_v8, 1  ;;  %v298_v10 = vrot.slane %v295_v24, 7 }
 0x1ac   :  { %v314_v37 = vrot.slane %v295_v24, 1  ;;  %v194_v39 = vadd.f32 %v190_v31, %v177_v7  ;;  %v202_v40 = vsel %vm200_vm6, %v197_v21, %v199_v19  ;;  %v212_v41 = vadd.f32 %v208_v33, %v195_v32 }
 0x1ad   :  { %v337_v38 = vand.u32 2147483647, %v333_v30  ;;  %v302_v42 = vsel %vm183_vm5, %v298_v10, %v300_v34  ;;  %v304_v36 = vsel %vm183_vm5, %v300_v34, %v298_v10  ;;  %v338_v44 = vand.u32 2147483647, %v334_v28 }
 0x1ae   :  { %v320_v43 = vsel %vm200_vm6, %v316_v35, %v314_v37  ;;  %v211_v45 = vadd.f32 %v202_v40, %v194_v39  ;;  %v307_v46 = vmul.f32 %v670_v4, %v304_v36  ;;  %v312_v2 = vadd.f32 %v302_v42, %v296_v8 }
 0x1af   :  { %v324_v48 = vmul.f32 %v673_v29, %v320_v43  ;;  %v220_v3 = vsub.f32 %v700_v55, %v212_v41  ;;  %v341_v53 = vsub.f32 %v221_v22, %v337_v38  ;;  %v318_v54 = vsel %vm200_vm6, %v314_v37, %v316_v35 }
 0x1b0   :  { %v311_v51 = vadd.f32 %v307_v46, %v295_v24  ;;  %v219_v0 = vsub.f32 %v696_v47, %v211_v45  ;;  %v342_v4 = vsub.f32 %v222_v50, %v338_v44 }
 0x1b1   :  { %v328_v52 = vadd.f32 %v324_v48, %v312_v2  ;;  %v224_v59 = vand.u32 2147483647, %v220_v3  ;;  %v353_v60 = vmul.f32 %v341_v53, %v341_v53 }
 0x1b2   :  { %v327_v1 = vadd.f32 %v318_v54, %v311_v51  ;;  %v223_v9 = vand.u32 2147483647, %v219_v0  ;;  %v354_v62 = vmul.f32 %v342_v4, %v342_v4 }
 0x1b3   :  { %v336_v57 = vsub.f32 %v703_v56, %v328_v52  ;;  %v358_v63 = vsel %vm357_vm7, %v353_v60, 0.0 }
 0x1b4   :  { %v335_v58 = vsub.f32 %v331_v49, %v327_v1  ;;  %v359_v7 = vsel %vm357_vm7, %v354_v62, 0.0 }
 0x1b5   :  { %v340_v29 = vand.u32 2147483647, %v336_v57  ;;  %v360_v11 = vadd.f32 %v359_v7, %v358_v63 }
 0x1b6   :  { %v339_v61 = vand.u32 2147483647, %v335_v58 }
 0x1b7   :  { %v344_v5 = vsub.f32 %v224_v59, %v340_v29 }
 0x1b8   :  { %v343_v55 = vsub.f32 %v223_v9, %v339_v61 }
 0x1b9   :  { %v356_v13 = vmul.f32 %v344_v5, %v344_v5 }
 0x1ba   :  { %v355_v6 = vmul.f32 %v343_v55, %v343_v55 }
 0x1bb   :  { %v363_v14 = vsel %vm357_vm7, %v356_v13, 0.0 }
 0x1bc   :  { %v361_v47 = vsel %vm357_vm7, %v355_v6, 0.0 }
 0x1bd   :  { %v362_v12 = vadd.f32 %v361_v47, %v360_v11 }
 0x1bf   :  { %v364_v56 = vadd.f32 %v363_v14, %v362_v12 }
 0x1c1   :  { %365 = vadd.xlane.f32.xlu0 %v364_v56 }
 0x24e   :  { %v366_v15 = vpop.xlane.xlu0 %365 }
 0x24f   :  { %v367_v16 = vrot.slane %v366_v15, 4 }
 0x251   :  { %v368_v17 = vadd.f32 %v367_v16, %v366_v15 }
 0x253   :  { %v369_v18 = vrot.slane %v368_v17, 2 }
 0x255   :  { %v370_v19 = vadd.f32 %v369_v18, %v368_v17 }
 0x257   :  { %v371_v20 = vrot.slane %v370_v19, 1 }
 0x259   :  { %v372_v21 = vadd.f32 %v371_v20, %v370_v19 }
 0x25b   :  { %442 = vpush %v372_v21 }
 0x28c   :  { %s443_s12 = spop %442 }
 0x28d   :  { %v374_v22 = vstv %s443_s12 }
 0x28e   :  { %376 = vst [vmem:[#allocation7] sm:$0xff] %v374_v22 }
 0x28f   :  { %510 = shalt.err (!%p507_p6)
}
 0x290   :  { %s511_s16 = scalar_lea.hbm %s758_s2, 128 }
 0x291   :  { %p512_p7 = scmp.ne.s32.totalorder %s758_s2, %s511_s16  ;;  %p515_p8 = scmp.lt.u32.totalorder %s511_s16, %s758_s2 }
 0x293   :  { %p517_p9 = pnand %p515_p8, %p512_p7 }
 0x295   :  { %520 = shalt.err (!%p517_p9)
}
 0x296   :  { %427 = dma.vmem_to_hbm [thread:$0]  %s425_s11, 128, %s758_s2, [#allocation4]  }
 0x297   :  { %525 = dma.done.wait [#allocation4], 128  }
 0x298   :  { %526 = vsyncadd [#allocation4], 4294967168 }
 0x299   :  { %431 = vsyncpa [#allocation3], 1 }
 0x29a   :  { %432 = vsyncpa [#allocation6], 1 }
 0x29b   :  { %433 = vsyncpa [#allocation4], 1 }

</bundles_post_ra>
